<compile_context>
chip_gen: v7x
topology: tpu7x:2x2x1
jax: 0.10.0
libtpu: 0.0.40
codegen_flags: <defaults>
</compile_context>

<pallas_src>
import math

import numpy as np
import jax
import jax.numpy as jnp
from jax.experimental import pallas as pl
from jax.experimental.pallas import tpu as pltpu

# ----------------------------- model sizes -----------------------------------
B = 4              # batch
C = 3              # image channels (pixel_mean/std have 3 entries)
H = W = 16         # spatial
PATCH = 8          # patch size for the stand-in visual encoder
VISUAL_WIDTH = 128
TEXTUAL_WIDTH = 128
EMBED_DIM = 128
VOCAB = 64
CTX_LEN = 8        # textual.context_length

CPP = C * PATCH * PATCH          # 192 patch features
K_PAD = 384                      # padded fused contraction dim: 256 (vis) + 128 (txt)
WIDTH2 = VISUAL_WIDTH + TEXTUAL_WIDTH   # 256

PIXEL_MEAN = (0.485, 0.456, 0.406)
PIXEL_STD = (0.229, 0.224, 0.225)


# ----------------------------- fused Pallas kernel ----------------------------
def _l2_normalize(x):
    # Matches F.normalize(dim=-1): x / max(||x||, 1e-12)  ==  x * rsqrt(max(ss, 1e-24))
    ss = jnp.sum(x * x, axis=-1, keepdims=True)
    return x * jax.lax.rsqrt(jnp.maximum(ss, 1e-24))


def _clip_fused_kernel(lhs_ref, w_enc_ref, b_enc_ref, w_proj_ref, scale_ref, loss_ref):
    scale = scale_ref[0, 0]

    # Stage 1: fused (visual | text) encoder matmul, pixel-norm folded into
    # w_enc / b_enc.  Result lanes 0:128 = visual width feats, 128:256 = text.
    h = jnp.dot(lhs_ref[...], w_enc_ref[...],
                preferred_element_type=jnp.float32) + b_enc_ref[...]      # (B, 256)

    # Stage 2: fused block-diagonal projection (visual_proj | textual_proj).
    z = jnp.dot(h, w_proj_ref[...], preferred_element_type=jnp.float32)  # (B, 256)

    img_feats = _l2_normalize(z[:, :EMBED_DIM])                          # (B, 128)
    txt_feats = _l2_normalize(z[:, EMBED_DIM:])                          # (B, 128)

    # Similarity + symmetric cross-entropy (targets = arange(B), rank 0).
    # image_logits = scale * img @ txt.T ; text_logits == image_logits.T
    logits = scale * jax.lax.dot_general(
        img_feats, txt_feats, (((1,), (1,)), ((), ())),
        preferred_element_type=jnp.float32)                               # (B, B)
    bsz = logits.shape[0]
    row = jax.lax.broadcasted_iota(jnp.int32, (bsz, bsz), 0)
    col = jax.lax.broadcasted_iota(jnp.int32, (bsz, bsz), 1)
    # Diagonal of logits == diagonal of logits.T -> one masked pass serves both CEs.
    diag_sum = jnp.sum(jnp.where(row == col, logits, 0.0))
    # image->text CE over rows.
    m_r = jnp.max(logits, axis=1, keepdims=True)
    lse_r = m_r + jnp.log(jnp.sum(jnp.exp(logits - m_r), axis=1, keepdims=True))
    # text->image CE over columns (rows of logits.T).
    m_c = jnp.max(logits, axis=0, keepdims=True)
    lse_c = m_c + jnp.log(jnp.sum(jnp.exp(logits - m_c), axis=0, keepdims=True))
    loss_ref[0, 0] = 0.5 * (jnp.sum(lse_r) + jnp.sum(lse_c) - 2.0 * diag_sum) / bsz


def fused_clip_loss(lhs, w_enc, b_enc, w_proj, scale):
    loss = pl.pallas_call(
        _clip_fused_kernel,
        out_shape=jax.ShapeDtypeStruct((1, 1), jnp.float32),
        # No grid: whole arrays resident in VMEM, scalar scale/loss in SMEM.
        in_specs=[
            pl.BlockSpec(memory_space=pltpu.MemorySpace.VMEM),   # lhs (B, 384)
            pl.BlockSpec(memory_space=pltpu.MemorySpace.VMEM),   # w_enc (384, 256)
            pl.BlockSpec(memory_space=pltpu.MemorySpace.VMEM),   # b_enc (1, 256)
            pl.BlockSpec(memory_space=pltpu.MemorySpace.VMEM),   # w_proj (256, 256)
            pl.BlockSpec(memory_space=pltpu.MemorySpace.SMEM),   # scale (1, 1)
        ],
        out_specs=pl.BlockSpec(memory_space=pltpu.MemorySpace.SMEM),
    )(lhs, w_enc, b_enc, w_proj, jnp.reshape(scale, (1, 1)).astype(jnp.float32))
    return loss[0, 0]


# ----------------------------- weight packing (one-time) ----------------------
def pack_params(params):
    """Fold pixel normalization into the patch weight and build the two
    block-diagonal fused weights.  Run ONCE outside the jitted step."""
    p = PATCH
    mean_vec = jnp.repeat(params["pixel_mean"], p * p)                 # (192,)
    istd_vec = 1.0 / jnp.repeat(params["pixel_std"], p * p)            # (192,)
    w_vis = istd_vec[:, None] * params["w_patch"]                      # (192, 128)
    b_vis = (-(mean_vec * istd_vec)) @ params["w_patch"]               # (128,)

    # Stage-1 block-diagonal weight: rows [0:192] -> visual, rows [256:384] -> text.
    w_enc = jnp.zeros((K_PAD, WIDTH2), jnp.float32)
    w_enc = w_enc.at[:CPP, :VISUAL_WIDTH].set(w_vis)
    w_enc = w_enc.at[256:256 + TEXTUAL_WIDTH, VISUAL_WIDTH:].set(params["w_text"])
    b_enc = jnp.zeros((1, WIDTH2), jnp.float32)
    b_enc = b_enc.at[0, :VISUAL_WIDTH].set(b_vis)

    # Stage-2 block-diagonal projection.  nn.Linear weights are (out, in); the
    # forward is x @ W.T, so store the transposed blocks.
    w_proj = jnp.zeros((WIDTH2, 2 * EMBED_DIM), jnp.float32)
    w_proj = w_proj.at[:VISUAL_WIDTH, :EMBED_DIM].set(params["w_visual_proj"].T)
    w_proj = w_proj.at[VISUAL_WIDTH:, EMBED_DIM:].set(params["w_textual_proj"].T)

    return {
        "w_enc": w_enc,
        "b_enc": b_enc,
        "w_proj": w_proj,
        "tok_embed": params["tok_embed"],
        "logit_scale": params["logit_scale"],
    }


# ----------------------------- forward ----------------------------------------
def _clip_forward(packed, images, padded_tokens):
    b, c, h, w = images.shape
    p = PATCH

    # ---- visual preprocessing (pure layout + tiny reduce, stays in XLA) ------
    # Patch extraction + mean-pool over patches; pooling commutes with the
    # (affine-normalized) patch matmul, so the kernel only sees a (B, 192) slab.
    patches = images.reshape(b, c, h // p, p, w // p, p)
    patches = patches.transpose(0, 2, 4, 1, 3, 5).reshape(
        b, (h // p) * (w // p), c * p * p)
    pooled = patches.mean(axis=1)                                    # (B, 192)

    # ---- text preprocessing ---------------------------------------------------
    # TODO(synk): the injected `textual` TransformerTextEncoder is stood in by a
    # token embedding + one linear layer; since the stand-in is per-token, the
    # EOS gather is hoisted before the matmul (identical result, 8x less work).
    eos_idx = jnp.argmax(padded_tokens, axis=-1)                     # argmax of ids
    eos_tok = padded_tokens[jnp.arange(b), eos_idx]                  # (B,)
    emb_eos = jnp.take(packed["tok_embed"], eos_tok, axis=0)         # (B, 128)

    # Lane-aligned fused LHS: [pooled (192) | zeros (64) | eos-emb (128)] = (B, 384).
    pad = jnp.zeros((b, 256 - pooled.shape[1]), jnp.float32)
    lhs = jnp.concatenate([pooled, pad, emb_eos], axis=1)

    # Single-process run: dist.gather_across_processes == identity, rank == 0.
    logit_scale = jnp.minimum(packed["logit_scale"], 4.6052)         # clamp max
    scale = jnp.exp(logit_scale)

    loss = fused_clip_loss(lhs, packed["w_enc"], packed["b_enc"],
                           packed["w_proj"], scale)
    return {"loss": loss,
            "logging": {"contrastive_loss": loss, "logit_scale": scale}}


clip_forward = jax.jit(_clip_forward)


# ----------------------------- setup & run ------------------------------------
def init_params(key):
    k = jax.random.split(key, 5)
    patch_dim = CPP
    return {
        "pixel_mean": jnp.asarray(PIXEL_MEAN, dtype=jnp.float32),
        "pixel_std": jnp.asarray(PIXEL_STD, dtype=jnp.float32),
        # TODO(synk): the injected `visual` ConvNet/ViT is stood in by a patch
        # embedding + mean pool producing (B, visual.width).
        "w_patch": jax.random.normal(k[0], (patch_dim, VISUAL_WIDTH),
                                     jnp.float32) * patch_dim ** (-0.5),
        "tok_embed": jax.random.normal(k[1], (VOCAB, TEXTUAL_WIDTH),
                                       jnp.float32) * 0.02,
        "w_text": jax.random.normal(k[2], (TEXTUAL_WIDTH, TEXTUAL_WIDTH),
                                    jnp.float32) * TEXTUAL_WIDTH ** (-0.5),
        # nn.Linear weights are (out_features, in_features), no bias.
        "w_visual_proj": jax.random.normal(k[3], (EMBED_DIM, VISUAL_WIDTH),
                                           jnp.float32) * VISUAL_WIDTH ** (-0.5),
        "w_textual_proj": jax.random.normal(k[4], (EMBED_DIM, TEXTUAL_WIDTH),
                                            jnp.float32) * TEXTUAL_WIDTH ** (-0.5),
        "logit_scale": jnp.asarray(math.log(1.0 / 0.07), dtype=jnp.float32),
    }


def pad_tokens(token_lists, context_length):
    # Mirrors CLIPBaseline.encode_text preprocessing: truncate keeping the EOT
    # token at the end, then right-pad with zeros (pad_sequence, batch_first).
    processed = []
    for t in token_lists:
        t = np.asarray(t, dtype=np.int32)
        if len(t) > context_length:
            eot = t[-1]
            t = t[:context_length].copy()
            t[-1] = eot
        processed.append(t)
    max_len = max(len(t) for t in processed)
    padded = np.zeros((len(processed), max_len), dtype=np.int32)
    for i, t in enumerate(processed):
        padded[i, :len(t)] = t
    return jnp.asarray(padded)


if __name__ == "__main__":
    key = jax.random.PRNGKey(0)
    pkey, ikey = jax.random.split(key)
    params = init_params(pkey)
    packed = pack_params(params)   # one-time weight fold/pack (outside jit)

    images = jax.random.uniform(ikey, (B, C, H, W), jnp.float32)  # pixels in [0, 1]

    eot = VOCAB - 1  # highest token id acts as EOT -> argmax-of-ids picks it
    assert eot == VOCAB - 1, "EOS selection relies on EOT being the max token id"
    token_lists = [
        [5, 9, 12, 7, eot],
        [3, 4, 5, 6, 7, 8, 9, 10, 11, eot],   # longer than context -> truncated
        [21, 2, eot],
        [1, 2, 3, 4, 5, 6, 7, eot],
    ]
    padded_tokens = pad_tokens(token_lists, CTX_LEN)

    out = clip_forward(packed, images, padded_tokens)
    jax.block_until_ready(out["loss"])
    jax.block_until_ready(out["logging"]["logit_scale"])
    assert np.isfinite(float(out["loss"]))
    print("KERNEL_OK")
</pallas_src>

<mosaic_0001>
module attributes {stable_mosaic.version = 11 : i64} {
  func.func @_clip_fused_kernel(%arg0: memref<4x384xf32, #tpu.memory_space<vmem>>, %arg1: memref<384x256xf32, #tpu.memory_space<vmem>>, %arg2: memref<1x256xf32, #tpu.memory_space<vmem>>, %arg3: memref<256x256xf32, #tpu.memory_space<vmem>>, %arg4: memref<1x1xf32, #tpu.memory_space<smem>>, %arg5: memref<1x1xf32, #tpu.memory_space<smem>>) attributes {dimension_semantics = [], scalar_prefetch = 0 : i64, scratch_operands = 0 : i64, tpu.core_type = #tpu.core_type<tc>} {
    %c0 = arith.constant 0 : index
    %c0_0 = arith.constant 0 : index
    %0 = memref.load %arg4[%c0, %c0_0] : memref<1x1xf32, #tpu.memory_space<smem>>
    %c0_1 = arith.constant 0 : index
    %c0_2 = arith.constant 0 : index
    %1 = vector.load %arg0[%c0_1, %c0_2] : memref<4x384xf32, #tpu.memory_space<vmem>>, vector<4x384xf32>
    %c0_3 = arith.constant 0 : index
    %c0_4 = arith.constant 0 : index
    %2 = vector.load %arg1[%c0_3, %c0_4] : memref<384x256xf32, #tpu.memory_space<vmem>>, vector<384x256xf32>
    %cst = arith.constant dense<0.000000e+00> : vector<4x256xf32>
    %3 = tpu.matmul %1, %2, %cst {dimension_numbers = #tpu.dot_dimension_numbers<[1], [0], [0], [1], [0, 0, 1, 1], [], []>} : vector<4x384xf32>, vector<384x256xf32>, vector<4x256xf32> -> vector<4x256xf32>
    %c0_5 = arith.constant 0 : index
    %c0_6 = arith.constant 0 : index
    %4 = vector.load %arg2[%c0_5, %c0_6] : memref<1x256xf32, #tpu.memory_space<vmem>>, vector<1x256xf32>
    %5 = vector.broadcast %4 : vector<1x256xf32> to vector<4x256xf32>
    %6 = arith.addf %3, %5 : vector<4x256xf32>
    %c0_7 = arith.constant 0 : index
    %c0_8 = arith.constant 0 : index
    %7 = vector.load %arg3[%c0_7, %c0_8] : memref<256x256xf32, #tpu.memory_space<vmem>>, vector<256x256xf32>
    %cst_9 = arith.constant dense<0.000000e+00> : vector<4x256xf32>
    %8 = tpu.matmul %6, %7, %cst_9 {dimension_numbers = #tpu.dot_dimension_numbers<[1], [0], [0], [1], [0, 0, 1, 1], [], []>} : vector<4x256xf32>, vector<256x256xf32>, vector<4x256xf32> -> vector<4x256xf32>
    %9 = vector.extract_strided_slice %8 {offsets = [0, 0], sizes = [4, 128], strides = [1, 1]} : vector<4x256xf32> to vector<4x128xf32>
    %10 = arith.mulf %9, %9 : vector<4x128xf32>
    %cst_10 = arith.constant dense<0.000000e+00> : vector<4xf32>
    %11 = vector.multi_reduction <add>, %10, %cst_10 [1] : vector<4x128xf32> to vector<4xf32>
    %12 = vector.shape_cast %11 : vector<4xf32> to vector<4x1xf32>
    %cst_11 = arith.constant 1.000000e-24 : f32
    %13 = vector.broadcast %cst_11 : f32 to vector<4x1xf32>
    %14 = arith.maximumf %12, %13 : vector<4x1xf32>
    %15 = math.rsqrt %14 : vector<4x1xf32>
    %16 = vector.broadcast %15 : vector<4x1xf32> to vector<4x128xf32>
    %17 = arith.mulf %9, %16 : vector<4x128xf32>
    %18 = vector.extract_strided_slice %8 {offsets = [0, 128], sizes = [4, 128], strides = [1, 1]} : vector<4x256xf32> to vector<4x128xf32>
    %19 = arith.mulf %18, %18 : vector<4x128xf32>
    %cst_12 = arith.constant dense<0.000000e+00> : vector<4xf32>
    %20 = vector.multi_reduction <add>, %19, %cst_12 [1] : vector<4x128xf32> to vector<4xf32>
    %21 = vector.shape_cast %20 : vector<4xf32> to vector<4x1xf32>
    %cst_13 = arith.constant 1.000000e-24 : f32
    %22 = vector.broadcast %cst_13 : f32 to vector<4x1xf32>
    %23 = arith.maximumf %21, %22 : vector<4x1xf32>
    %24 = math.rsqrt %23 : vector<4x1xf32>
    %25 = vector.broadcast %24 : vector<4x1xf32> to vector<4x128xf32>
    %26 = arith.mulf %18, %25 : vector<4x128xf32>
    %cst_14 = arith.constant dense<0.000000e+00> : vector<4x4xf32>
    %27 = tpu.matmul %17, %26, %cst_14 {dimension_numbers = #tpu.dot_dimension_numbers<[1], [1], [0], [0], [0, 0, 1, 0], [], []>} : vector<4x128xf32>, vector<4x128xf32>, vector<4x4xf32> -> vector<4x4xf32>
    %28 = vector.broadcast %0 : f32 to vector<4x4xf32>
    %29 = arith.mulf %28, %27 : vector<4x4xf32>
    %30 = tpu.iota {dimensions = array<i32: 0>} : vector<4x4xi32>
    %31 = tpu.iota {dimensions = array<i32: 1>} : vector<4x4xi32>
    %32 = arith.cmpi eq, %30, %31 : vector<4x4xi32>
    %cst_15 = arith.constant 0.000000e+00 : f32
    %33 = vector.broadcast %cst_15 : f32 to vector<4x4xf32>
    %34 = arith.select %32, %29, %33 : vector<4x4xi1>, vector<4x4xf32>
    %35 = vector.shape_cast %34 : vector<4x4xf32> to vector<1x4x4xf32>
    %cst_16 = arith.constant dense<0.000000e+00> : vector<1xf32>
    %36 = vector.multi_reduction <add>, %35, %cst_16 [1, 2] : vector<1x4x4xf32> to vector<1xf32>
    %37 = vector.shape_cast %36 : vector<1xf32> to vector<1x1x1xf32>
    %38 = vector.extract %37[0, 0, 0] : f32 from vector<1x1x1xf32>
    %cst_17 = arith.constant dense<0xFF800000> : vector<4xf32>
    %39 = vector.multi_reduction <maximumf>, %29, %cst_17 [1] : vector<4x4xf32> to vector<4xf32>
    %40 = vector.shape_cast %39 : vector<4xf32> to vector<4x1xf32>
    %41 = vector.broadcast %40 : vector<4x1xf32> to vector<4x4xf32>
    %42 = arith.subf %29, %41 : vector<4x4xf32>
    %43 = math.exp %42 : vector<4x4xf32>
    %cst_18 = arith.constant dense<0.000000e+00> : vector<4xf32>
    %44 = vector.multi_reduction <add>, %43, %cst_18 [1] : vector<4x4xf32> to vector<4xf32>
    %45 = vector.shape_cast %44 : vector<4xf32> to vector<4x1xf32>
    %46 = math.log %45 : vector<4x1xf32>
    %47 = arith.addf %40, %46 : vector<4x1xf32>
    %cst_19 = arith.constant dense<0xFF800000> : vector<4xf32>
    %48 = vector.multi_reduction <maximumf>, %29, %cst_19 [0] : vector<4x4xf32> to vector<4xf32>
    %49 = vector.shape_cast %48 : vector<4xf32> to vector<1x4xf32>
    %50 = vector.broadcast %49 : vector<1x4xf32> to vector<4x4xf32>
    %51 = arith.subf %29, %50 : vector<4x4xf32>
    %52 = math.exp %51 : vector<4x4xf32>
    %cst_20 = arith.constant dense<0.000000e+00> : vector<4xf32>
    %53 = vector.multi_reduction <add>, %52, %cst_20 [0] : vector<4x4xf32> to vector<4xf32>
    %54 = vector.shape_cast %53 : vector<4xf32> to vector<1x4xf32>
    %55 = math.log %54 : vector<1x4xf32>
    %56 = arith.addf %49, %55 : vector<1x4xf32>
    %57 = vector.shape_cast %47 : vector<4x1xf32> to vector<1x4x1xf32>
    %cst_21 = arith.constant dense<0.000000e+00> : vector<1xf32>
    %58 = vector.multi_reduction <add>, %57, %cst_21 [1, 2] : vector<1x4x1xf32> to vector<1xf32>
    %59 = vector.shape_cast %58 : vector<1xf32> to vector<1x1x1xf32>
    %60 = vector.extract %59[0, 0, 0] : f32 from vector<1x1x1xf32>
    %61 = vector.shape_cast %56 : vector<1x4xf32> to vector<1x1x4xf32>
    %cst_22 = arith.constant dense<0.000000e+00> : vector<1xf32>
    %62 = vector.multi_reduction <add>, %61, %cst_22 [1, 2] : vector<1x1x4xf32> to vector<1xf32>
    %63 = vector.shape_cast %62 : vector<1xf32> to vector<1x1x1xf32>
    %64 = vector.extract %63[0, 0, 0] : f32 from vector<1x1x1xf32>
    %65 = arith.addf %60, %64 : f32
    %cst_23 = arith.constant 2.000000e+00 : f32
    %66 = arith.mulf %cst_23, %38 : f32
    %67 = arith.subf %65, %66 : f32
    %cst_24 = arith.constant 5.000000e-01 : f32
    %68 = arith.mulf %cst_24, %67 : f32
    %cst_25 = arith.constant 4.000000e+00 : f32
    %69 = arith.divf %68, %cst_25 : f32
    %c0_26 = arith.constant 0 : index
    %c0_27 = arith.constant 0 : index
    %70 = memref.load %arg5[%c0_26, %c0_27] : memref<1x1xf32, #tpu.memory_space<smem>>
    memref.store %69, %arg5[%c0_26, %c0_27] : memref<1x1xf32, #tpu.memory_space<smem>>
    return
  }
}

</mosaic_0001>

<bundles_post_ra>
// kernel: _clip_forward.1
= control target key start
LH: loop header
LB: loop body
LE: loop exit
PB: predicated region body
PF: predicated region fallthrough
CT: control target
= control target key end

     0   :  { %s1346_s0 = inlined_call_operand.vmem [shape: f32[4,384], index: 0, kind: input, shape index: {}]   ;;  %s1347_s1 = inlined_call_operand.vmem [shape: f32[384,256], index: 1, kind: input, shape index: {}]   ;;  %s1348_s2 = inlined_call_operand.vmem [shape: f32[1,256], index: 2, kind: input, shape index: {}]   ;;  %s1349_s3 = inlined_call_operand.vmem [shape: f32[256,256], index: 3, kind: input, shape index: {}]   ;;  %s1350_s4 = inlined_call_operand.<no memory space> [shape: f32[1,1], index: 4, kind: input, shape index: {}]   ;;  %s1351_s5 = inlined_call_operand.hbm [shape: f32[1,1], index: 5, kind: output, shape index: {}]  }
   0x1   :  { %v26_v0 = vld [vmem:[%s1347_s1 + $0x8] sm:$0xff]  ;;  %v28_v1 = vld [vmem:[%s1347_s1 + $0x18] sm:$0xff]  ;;  %v25_v2 = vld [vmem:[%s1347_s1] sm:$0xff] }
   0x2   :  { %v599_v3 = vpack.c.bf16 %v28_v1, %v26_v0  ;;  %v27_v4 = vld [vmem:[%s1347_s1 + $0x10] sm:$0xff]  ;;  %v30_v5 = vld [vmem:[%s1347_s1 + $0x28] sm:$0xff]  ;;  %v32_v6 = vld [vmem:[%s1347_s1 + $0x38] sm:$0xff] }
   0x3   :  { %v601_v7 = vpack.c.bf16 %v27_v4, %v25_v2  ;;  %v603_v8 = vpack.c.bf16 %v32_v6, %v30_v5  ;;  %v29_v9 = vld [vmem:[%s1347_s1 + $0x20] sm:$0xff]  ;;  %v31_v10 = vld [vmem:[%s1347_s1 + $0x30] sm:$0xff]  ;;  %v34_v11 = vld [vmem:[%s1347_s1 + $0x48] sm:$0xff] }
   0x4   :  { %600 = vmatprep.subr.bf16.mxu0 %v599_v3  ;;  %v36_v12 = vld [vmem:[%s1347_s1 + $0x58] sm:$0xff]  ;;  %v605_v13 = vpack.c.bf16 %v31_v10, %v29_v9  ;;  %v33_v15 = vld [vmem:[%s1347_s1 + $0x40] sm:$0xff]  ;;  %v35_v16 = vld [vmem:[%s1347_s1 + $0x50] sm:$0xff] }
   0x5   :  { %602 = vmatpush1.bf16.msra.mxu0 %v601_v7  ;;  %v607_v14 = vpack.c.bf16 %v36_v12, %v34_v11  ;;  %v38_v17 = vld [vmem:[%s1347_s1 + $0x68] sm:$0xff]  ;;  %v40_v18 = vld [vmem:[%s1347_s1 + $0x78] sm:$0xff]  ;;  %v609_v19 = vpack.c.bf16 %v35_v16, %v33_v15  ;;  %v37_v21 = vld [vmem:[%s1347_s1 + $0x60] sm:$0xff] }
   0x6   :  { %604 = vmatprep.subr.bf16.mxu0 %v603_v8  ;;  %v611_v20 = vpack.c.bf16 %v40_v18, %v38_v17  ;;  %v39_v22 = vld [vmem:[%s1347_s1 + $0x70] sm:$0xff]  ;;  %v42_v23 = vld [vmem:[%s1347_s1 + $0x88] sm:$0xff]  ;;  %v44_v24 = vld [vmem:[%s1347_s1 + $0x98] sm:$0xff] }
   0x7   :  { %v613_v25 = vpack.c.bf16 %v39_v22, %v37_v21  ;;  %v615_v26 = vpack.c.bf16 %v44_v24, %v42_v23  ;;  %v41_v27 = vld [vmem:[%s1347_s1 + $0x80] sm:$0xff]  ;;  %v43_v28 = vld [vmem:[%s1347_s1 + $0x90] sm:$0xff]  ;;  %v46_v29 = vld [vmem:[%s1347_s1 + $0xa8] sm:$0xff] }
   0x8   :  { %v48_v30 = vld [vmem:[%s1347_s1 + $0xb8] sm:$0xff]  ;;  %v617_v31 = vpack.c.bf16 %v43_v28, %v41_v27  ;;  %v45_v33 = vld [vmem:[%s1347_s1 + $0xa0] sm:$0xff]  ;;  %v47_v34 = vld [vmem:[%s1347_s1 + $0xb0] sm:$0xff] }
   0x9   :  { %606 = vmatpush1.bf16.msra.mxu0 %v605_v13  ;;  %v619_v32 = vpack.c.bf16 %v48_v30, %v46_v29  ;;  %v50_v35 = vld [vmem:[%s1347_s1 + $0xc8] sm:$0xff]  ;;  %v52_v36 = vld [vmem:[%s1347_s1 + $0xd8] sm:$0xff]  ;;  %v621_v37 = vpack.c.bf16 %v47_v34, %v45_v33  ;;  %v49_v39 = vld [vmem:[%s1347_s1 + $0xc0] sm:$0xff] }
   0xa   :  { %608 = vmatprep.subr.bf16.mxu0 %v607_v14  ;;  %v623_v38 = vpack.c.bf16 %v52_v36, %v50_v35  ;;  %v51_v40 = vld [vmem:[%s1347_s1 + $0xd0] sm:$0xff]  ;;  %v917_v41 = vld [vmem:[%s1346_s0] sm:$0xff]  ;;  %v54_v42 = vld [vmem:[%s1347_s1 + $0xe8] sm:$0xff] }
   0xb   :  { %v56_v43 = vld [vmem:[%s1347_s1 + $0xf8] sm:$0xff]  ;;  %v134_v44 = vcombine.high %v917_v41, %v917_v41  ;;  %v625_v45 = vpack.c.bf16 %v51_v40, %v49_v39  ;;  %v53_v47 = vld [vmem:[%s1347_s1 + $0xe0] sm:$0xff]  ;;  %v55_v48 = vld [vmem:[%s1347_s1 + $0xf0] sm:$0xff] }
   0xc   :  { %v627_v46 = vpack.c.bf16 %v56_v43, %v54_v42  ;;  %v58_v49 = vld [vmem:[%s1347_s1 + $0x108] sm:$0xff]  ;;  %v60_v50 = vld [vmem:[%s1347_s1 + $0x118] sm:$0xff]  ;;  %v629_v51 = vpack.c.bf16 %v55_v48, %v53_v47  ;;  %v57_v53 = vld [vmem:[%s1347_s1 + $0x100] sm:$0xff] }
   0xd   :  { %610 = vmatpush1.bf16.msra.mxu0 %v609_v19  ;;  %200 = vmatprep.mubr.f32.mxu0 %v134_v44  ;;  %v631_v52 = vpack.c.bf16 %v60_v50, %v58_v49  ;;  %v59_v54 = vld [vmem:[%s1347_s1 + $0x110] sm:$0xff]  ;;  %v62_v55 = vld [vmem:[%s1347_s1 + $0x128] sm:$0xff]  ;;  %v64_v56 = vld [vmem:[%s1347_s1 + $0x138] sm:$0xff] }
   0xe   :  { %612 = vmatprep.subr.bf16.mxu0 %v611_v20  ;;  %v61_v57 = vld [vmem:[%s1347_s1 + $0x120] sm:$0xff]  ;;  %v63_v58 = vld [vmem:[%s1347_s1 + $0x130] sm:$0xff]  ;;  %v633_v59 = vpack.c.bf16 %v59_v54, %v57_v53  ;;  %v66_v60 = vld [vmem:[%s1347_s1 + $0x148] sm:$0xff]  ;;  %v635_v63 = vpack.c.bf16 %v64_v56, %v62_v55 }
   0xf   :  { %v68_v61 = vld [vmem:[%s1347_s1 + $0x158] sm:$0xff]  ;;  %v279_v62 = vld [vmem:[%s1349_s3 + $0x8] sm:$0xff]  ;;  %v278_v1 = vld [vmem:[%s1349_s3] sm:$0xff]  ;;  %v637_v12 = vpack.c.bf16 %v63_v58, %v61_v57 }
  0x10   :  { %v281_v0 = vld [vmem:[%s1349_s3 + $0x18] sm:$0xff]  ;;  %v280_v2 = vld [vmem:[%s1349_s3 + $0x10] sm:$0xff]  ;;  %v283_v5 = vld [vmem:[%s1349_s3 + $0x28] sm:$0xff]  ;;  %v639_v13 = vpack.c.bf16 %v68_v61, %v66_v60 }
  0x11   :  { %614 = vmatpush1.bf16.msra.mxu0 %v613_v25  ;;  %v695_v3 = vpack.c.bf16 %v281_v0, %v279_v62  ;;  %v697_v4 = vpack.c.bf16 %v280_v2, %v278_v1  ;;  %v285_v6 = vld [vmem:[%s1349_s3 + $0x38] sm:$0xff]  ;;  %v282_v7 = vld [vmem:[%s1349_s3 + $0x20] sm:$0xff]  ;;  %v284_v9 = vld [vmem:[%s1349_s3 + $0x30] sm:$0xff] }
  0x12   :  { %616 = vmatprep.subr.bf16.mxu0 %v615_v26  ;;  %v699_v8 = vpack.c.bf16 %v285_v6, %v283_v5  ;;  %v287_v10 = vld [vmem:[%s1349_s3 + $0x48] sm:$0xff]  ;;  %v289_v11 = vld [vmem:[%s1349_s3 + $0x58] sm:$0xff]  ;;  %v65_v14 = vld [vmem:[%s1347_s1 + $0x140] sm:$0xff]  ;;  %v701_v17 = vpack.c.bf16 %v284_v9, %v282_v7 }
  0x13   :  { %696 = vmatprep.subr.bf16.mxu1 %v695_v3  ;;  %v67_v15 = vld [vmem:[%s1347_s1 + $0x150] sm:$0xff]  ;;  %v70_v16 = vld [vmem:[%s1347_s1 + $0x168] sm:$0xff]  ;;  %v72_v18 = vld [vmem:[%s1347_s1 + $0x178] sm:$0xff]  ;;  %v703_v19 = vpack.c.bf16 %v289_v11, %v287_v10 }
  0x14   :  { %698 = vmatpush1.bf16.msra.mxu1 %v697_v4  ;;  %v286_v20 = vld [vmem:[%s1349_s3 + $0x40] sm:$0xff]  ;;  %v288_v21 = vld [vmem:[%s1349_s3 + $0x50] sm:$0xff]  ;;  %v291_v22 = vld [vmem:[%s1349_s3 + $0x68] sm:$0xff]  ;;  %v641_v24 = vpack.c.bf16 %v67_v15, %v65_v14  ;;  %v643_v25 = vpack.c.bf16 %v72_v18, %v70_v16 }
  0x15   :  { %618 = vmatpush1.bf16.msra.mxu0 %v617_v31  ;;  %700 = vmatprep.subr.bf16.mxu1 %v699_v8  ;;  %v293_v23 = vld [vmem:[%s1349_s3 + $0x78] sm:$0xff]  ;;  %v69_v26 = vld [vmem:[%s1347_s1 + $0x160] sm:$0xff]  ;;  %v71_v27 = vld [vmem:[%s1347_s1 + $0x170] sm:$0xff]  ;;  %v705_v29 = vpack.c.bf16 %v288_v21, %v286_v20 }
  0x16   :  { %620 = vmatprep.subr.bf16.mxu0 %v619_v32  ;;  %v74_v28 = vld [vmem:[%s1347_s1 + $0x188] sm:$0xff]  ;;  %v76_v30 = vld [vmem:[%s1347_s1 + $0x198] sm:$0xff]  ;;  %v707_v31 = vpack.c.bf16 %v293_v23, %v291_v22  ;;  %v290_v32 = vld [vmem:[%s1349_s3 + $0x60] sm:$0xff]  ;;  %v645_v36 = vpack.c.bf16 %v71_v27, %v69_v26 }
  0x17   :  { %v292_v33 = vld [vmem:[%s1349_s3 + $0x70] sm:$0xff]  ;;  %v295_v34 = vld [vmem:[%s1349_s3 + $0x88] sm:$0xff]  ;;  %v297_v35 = vld [vmem:[%s1349_s3 + $0x98] sm:$0xff] }
  0x18   :  { %702 = vmatpush1.bf16.msra.mxu1 %v701_v17  ;;  %v75_v39 = vld [vmem:[%s1347_s1 + $0x190] sm:$0xff]  ;;  %v78_v40 = vld [vmem:[%s1347_s1 + $0x1a8] sm:$0xff]  ;;  %v709_v42 = vpack.c.bf16 %v292_v33, %v290_v32  ;;  %v80_v43 = vld [vmem:[%s1347_s1 + $0x1b8] sm:$0xff]  ;;  %v711_v44 = vpack.c.bf16 %v297_v35, %v295_v34 }
  0x19   :  { %622 = vmatpush1.bf16.msra.mxu0 %v621_v37  ;;  %704 = vmatprep.subr.bf16.mxu1 %v703_v19  ;;  %v647_v37 = vpack.c.bf16 %v76_v30, %v74_v28  ;;  %v299_v47 = vld [vmem:[%s1349_s3 + $0xa8] sm:$0xff]  ;;  %v301_v48 = vld [vmem:[%s1349_s3 + $0xb8] sm:$0xff]  ;;  %v651_v50 = vpack.c.bf16 %v80_v43, %v78_v40  ;;  %v298_v57 = vld [vmem:[%s1349_s3 + $0xa0] sm:$0xff] }
  0x1a   :  { %624 = vmatprep.subr.bf16.mxu0 %v623_v38  ;;  %v73_v38 = vld [vmem:[%s1347_s1 + $0x180] sm:$0xff]  ;;  %v82_v53 = vld [vmem:[%s1347_s1 + $0x1c8] sm:$0xff]  ;;  %v84_v55 = vld [vmem:[%s1347_s1 + $0x1d8] sm:$0xff]  ;;  %v715_v56 = vpack.c.bf16 %v301_v48, %v299_v47 }
  0x1b   :  { %v649_v49 = vpack.c.bf16 %v75_v39, %v73_v38  ;;  %v300_v58 = vld [vmem:[%s1349_s3 + $0xb0] sm:$0xff]  ;;  %v305_v60 = vld [vmem:[%s1349_s3 + $0xd8] sm:$0xff]  ;;  %v81_v62 = vld [vmem:[%s1347_s1 + $0x1c0] sm:$0xff] }
  0x1c   :  { %706 = vmatpush1.bf16.msra.mxu1 %v705_v29  ;;  %v83_v0 = vld [vmem:[%s1347_s1 + $0x1d0] sm:$0xff]  ;;  %v86_v1 = vld [vmem:[%s1347_s1 + $0x1e8] sm:$0xff]  ;;  %v717_v2 = vpack.c.bf16 %v300_v58, %v298_v57 }
  0x1d   :  { %626 = vmatpush1.bf16.msra.mxu0 %v625_v45  ;;  %708 = vmatprep.subr.bf16.mxu1 %v707_v31  ;;  %v294_v45 = vld [vmem:[%s1349_s3 + $0x80] sm:$0xff] }
  0x1e   :  { %628 = vmatprep.subr.bf16.mxu0 %v627_v46  ;;  %v296_v46 = vld [vmem:[%s1349_s3 + $0x90] sm:$0xff] }
  0x1f   :  { %v713_v54 = vpack.c.bf16 %v296_v46, %v294_v45 }
  0x20   :  { %710 = vmatpush1.bf16.msra.mxu1 %v709_v42 }
  0x21   :  { %630 = vmatpush1.bf16.msra.mxu0 %v629_v51  ;;  %v77_v51 = vld [vmem:[%s1347_s1 + $0x1a0] sm:$0xff]  ;;  %712 = vmatprep.subr.bf16.mxu1 %v711_v44 }
  0x22   :  { %632 = vmatprep.subr.bf16.mxu0 %v631_v52  ;;  %v79_v52 = vld [vmem:[%s1347_s1 + $0x1b0] sm:$0xff] }
  0x23   :  { %v653_v61 = vpack.c.bf16 %v79_v52, %v77_v51 }
  0x24   :  { %714 = vmatpush1.bf16.msra.mxu1 %v713_v54 }
  0x25   :  { %634 = vmatpush1.bf16.msra.mxu0 %v633_v59  ;;  %v303_v59 = vld [vmem:[%s1349_s3 + $0xc8] sm:$0xff] }
  0x26   :  { %636 = vmatprep.subr.bf16.mxu0 %v635_v63  ;;  %v655_v63 = vpack.c.bf16 %v84_v55, %v82_v53 }
  0x29   :  { %638 = vmatpush1.bf16.msra.mxu0 %v637_v12 }
  0x2a   :  { %640 = vmatprep.subr.bf16.mxu0 %v639_v13 }
  0x2d   :  { %642 = vmatpush1.bf16.msra.mxu0 %v641_v24 }
  0x2e   :  { %644 = vmatprep.subr.bf16.mxu0 %v643_v25 }
  0x31   :  { %646 = vmatpush1.bf16.msra.mxu0 %v645_v36 }
  0x32   :  { %648 = vmatprep.subr.bf16.mxu0 %v647_v37 }
  0x35   :  { %650 = vmatpush1.bf16.msra.mxu0 %v649_v49 }
  0x36   :  { %652 = vmatprep.subr.bf16.mxu0 %v651_v50 }
  0x37   :  { %11 = vsyncpa [#allocation4], 0  ;;  %v88_v3 = vld [vmem:[%s1347_s1 + $0x1f8] sm:$0xff]  ;;  %716 = vmatprep.subr.bf16.mxu1 %v715_v56  ;;  %v719_v4 = vpack.c.bf16 %v305_v60, %v303_v59  ;;  %v302_v5 = vld [vmem:[%s1349_s3 + $0xc0] sm:$0xff]  ;;  %v657_v9 = vpack.c.bf16 %v83_v0, %v81_v62  ;;  %v797_v47 = vmov 0.0   ;;  %vm414_vm0 = vcmask 1043456  }
  0x38   :  { %v304_v6 = vld [vmem:[%s1349_s3 + $0xd0] sm:$0xff]  ;;  %v307_v7 = vld [vmem:[%s1349_s3 + $0xe8] sm:$0xff]  ;;  %v309_v8 = vld [vmem:[%s1349_s3 + $0xf8] sm:$0xff]  ;;  %v659_v10 = vpack.c.bf16 %v88_v3, %v86_v1  ;;  %718 = vmatpush1.bf16.msra.mxu1 %v717_v2  ;;  %vm798_vm1 = vmmov 0   ;;  %vm506_vm2 = vcmask 27648   ;;  %vm559_vm4 = vcmask 24576  }
  0x39   :  { %654 = vmatpush1.bf16.msra.mxu0 %v653_v61  ;;  %v85_v11 = vld [vmem:[%s1347_s1 + $0x1e0] sm:$0xff]  ;;  %v87_v12 = vld [vmem:[%s1347_s1 + $0x1f0] sm:$0xff]  ;;  %v90_v13 = vld [vmem:[%s1347_s1 + $0x208] sm:$0xff]  ;;  %v721_v14 = vpack.c.bf16 %v304_v6, %v302_v5  ;;  %720 = vmatprep.subr.bf16.mxu1 %v719_v4  ;;  %v723_v16 = vpack.c.bf16 %v309_v8, %v307_v7  ;;  %vm548_vm5 = vcmask 3072   ;;  %s785_s26 = scalar_lea.hbm %s1351_s5, 16 }
  0x3a   :  { %656 = vmatprep.subr.bf16.mxu0 %v655_v63  ;;  %v92_v15 = vld [vmem:[%s1347_s1 + $0x218] sm:$0xff]  ;;  %v306_v17 = vld [vmem:[%s1349_s3 + $0xe0] sm:$0xff]  ;;  %v308_v18 = vld [vmem:[%s1349_s3 + $0xf0] sm:$0xff]  ;;  %v661_v21 = vpack.c.bf16 %v87_v12, %v85_v11  ;;  %p786_p0 = scmp.ne.s32.totalorder %s1351_s5, %s785_s26  ;;  %p789_p1 = scmp.lt.u32.totalorder %s785_s26, %s1351_s5 }
  0x3b   :  { %v311_v19 = vld [vmem:[%s1349_s3 + $0x108] sm:$0xff]  ;;  %v313_v20 = vld [vmem:[%s1349_s3 + $0x118] sm:$0xff]  ;;  %v663_v22 = vpack.c.bf16 %v92_v15, %v90_v13  ;;  %v89_v23 = vld [vmem:[%s1347_s1 + $0x200] sm:$0xff]  ;;  %v725_v26 = vpack.c.bf16 %v308_v18, %v306_v17 }
  0x3c   :  { %v91_v24 = vld [vmem:[%s1347_s1 + $0x210] sm:$0xff]  ;;  %v94_v25 = vld [vmem:[%s1347_s1 + $0x228] sm:$0xff]  ;;  %722 = vmatpush1.bf16.msra.mxu1 %v721_v14  ;;  %v96_v27 = vld [vmem:[%s1347_s1 + $0x238] sm:$0xff]  ;;  %v727_v28 = vpack.c.bf16 %v313_v20, %v311_v19  ;;  %p791_p2 = pnand %p789_p1, %p786_p0 }
  0x3d   :  { %658 = vmatpush1.bf16.msra.mxu0 %v657_v9  ;;  %724 = vmatprep.subr.bf16.mxu1 %v723_v16  ;;  %v310_v29 = vld [vmem:[%s1349_s3 + $0x100] sm:$0xff]  ;;  %v312_v30 = vld [vmem:[%s1349_s3 + $0x110] sm:$0xff]  ;;  %v315_v31 = vld [vmem:[%s1349_s3 + $0x128] sm:$0xff]  ;;  %v665_v33 = vpack.c.bf16 %v91_v24, %v89_v23  ;;  %v667_v34 = vpack.c.bf16 %v96_v27, %v94_v25 }
  0x3e   :  { %660 = vmatprep.subr.bf16.mxu0 %v659_v10  ;;  %v317_v32 = vld [vmem:[%s1349_s3 + $0x138] sm:$0xff]  ;;  %v93_v35 = vld [vmem:[%s1347_s1 + $0x220] sm:$0xff]  ;;  %v95_v36 = vld [vmem:[%s1347_s1 + $0x230] sm:$0xff]  ;;  %v729_v38 = vpack.c.bf16 %v312_v30, %v310_v29 }
  0x3f   :  { %v98_v37 = vld [vmem:[%s1347_s1 + $0x248] sm:$0xff]  ;;  %v100_v39 = vld [vmem:[%s1347_s1 + $0x258] sm:$0xff]  ;;  %v731_v40 = vpack.c.bf16 %v317_v32, %v315_v31  ;;  %v314_v42 = vld [vmem:[%s1349_s3 + $0x120] sm:$0xff]  ;;  %v669_v46 = vpack.c.bf16 %v95_v36, %v93_v35 }
  0x40   :  { %726 = vmatpush1.bf16.msra.mxu1 %v725_v26  ;;  %v316_v43 = vld [vmem:[%s1349_s3 + $0x130] sm:$0xff]  ;;  %v319_v44 = vld [vmem:[%s1349_s3 + $0x148] sm:$0xff]  ;;  %v321_v45 = vld [vmem:[%s1349_s3 + $0x158] sm:$0xff]  ;;  %v671_v48 = vpack.c.bf16 %v100_v39, %v98_v37 }
  0x41   :  { %662 = vmatpush1.bf16.msra.mxu0 %v661_v21  ;;  %728 = vmatprep.subr.bf16.mxu1 %v727_v28  ;;  %v97_v49 = vld [vmem:[%s1347_s1 + $0x240] sm:$0xff]  ;;  %v102_v50 = vld [vmem:[%s1347_s1 + $0x268] sm:$0xff]  ;;  %v733_v51 = vpack.c.bf16 %v316_v43, %v314_v42  ;;  %v104_v52 = vld [vmem:[%s1347_s1 + $0x278] sm:$0xff]  ;;  %v735_v53 = vpack.c.bf16 %v321_v45, %v319_v44 }
  0x42   :  { %664 = vmatprep.subr.bf16.mxu0 %v663_v22  ;;  %v318_v54 = vld [vmem:[%s1349_s3 + $0x140] sm:$0xff]  ;;  %v320_v55 = vld [vmem:[%s1349_s3 + $0x150] sm:$0xff]  ;;  %v323_v56 = vld [vmem:[%s1349_s3 + $0x168] sm:$0xff]  ;;  %v675_v59 = vpack.c.bf16 %v104_v52, %v102_v50 }
  0x43   :  { %v325_v57 = vld [vmem:[%s1349_s3 + $0x178] sm:$0xff]  ;;  %v101_v60 = vld [vmem:[%s1347_s1 + $0x260] sm:$0xff]  ;;  %v103_v61 = vld [vmem:[%s1347_s1 + $0x270] sm:$0xff]  ;;  %v737_v63 = vpack.c.bf16 %v320_v55, %v318_v54  ;;  %v123_v54 = vlaneseq }
  0x44   :  { %201 = vmatmul.mubr.f32.vlgmr.msra.gmra.mrb[0].mxu0 %v917_v41  ;;  %v99_v41 = vld [vmem:[%s1347_s1 + $0x250] sm:$0xff]  ;;  %730 = vmatpush1.bf16.msra.mxu1 %v729_v38  ;;  %v106_v62 = vld [vmem:[%s1347_s1 + $0x288] sm:$0xff]  ;;  %v108_v0 = vld [vmem:[%s1347_s1 + $0x298] sm:$0xff]  ;;  %v739_v1 = vpack.c.bf16 %v325_v57, %v323_v56  ;;  %v677_v6 = vpack.c.bf16 %v103_v61, %v101_v60 }
  0x45   :  { %666 = vmatpush1.bf16.msra.mxu0 %v665_v33  ;;  %271 = vmatprep.mubr.f32.mxu0 %v797_v47  ;;  %v673_v58 = vpack.c.bf16 %v99_v41, %v97_v49  ;;  %v322_v2 = vld [vmem:[%s1349_s3 + $0x160] sm:$0xff]  ;;  %v324_v3 = vld [vmem:[%s1349_s3 + $0x170] sm:$0xff]  ;;  %v327_v4 = vld [vmem:[%s1349_s3 + $0x188] sm:$0xff]  ;;  %v679_v7 = vpack.c.bf16 %v108_v0, %v106_v62  ;;  %v124_v55 = vshrl.u32 %v123_v54, 7 }
  0x46   :  { %668 = vmatprep.subr.bf16.mxu0 %v667_v34  ;;  %732 = vmatprep.subr.bf16.mxu1 %v731_v40  ;;  %v329_v5 = vld [vmem:[%s1349_s3 + $0x198] sm:$0xff]  ;;  %v105_v8 = vld [vmem:[%s1347_s1 + $0x280] sm:$0xff]  ;;  %v107_v9 = vld [vmem:[%s1347_s1 + $0x290] sm:$0xff]  ;;  %v741_v11 = vpack.c.bf16 %v324_v3, %v322_v2 }
  0x47   :  { %v110_v10 = vld [vmem:[%s1347_s1 + $0x2a8] sm:$0xff]  ;;  %v112_v12 = vld [vmem:[%s1347_s1 + $0x2b8] sm:$0xff]  ;;  %v743_v13 = vpack.c.bf16 %v329_v5, %v327_v4  ;;  %v326_v14 = vld [vmem:[%s1349_s3 + $0x180] sm:$0xff]  ;;  %v681_v18 = vpack.c.bf16 %v107_v9, %v105_v8  ;;  %v129_v56 = vsub.s32 1, %v124_v55 }
  0x48   :  { %734 = vmatpush1.bf16.msra.mxu1 %v733_v51  ;;  %v328_v15 = vld [vmem:[%s1349_s3 + $0x190] sm:$0xff]  ;;  %v331_v16 = vld [vmem:[%s1349_s3 + $0x1a8] sm:$0xff]  ;;  %v333_v17 = vld [vmem:[%s1349_s3 + $0x1b8] sm:$0xff]  ;;  %v683_v19 = vpack.c.bf16 %v112_v12, %v110_v10 }
  0x49   :  { %670 = vmatpush1.bf16.msra.mxu0 %v669_v46  ;;  %736 = vmatprep.subr.bf16.mxu1 %v735_v53  ;;  %v109_v20 = vld [vmem:[%s1347_s1 + $0x2a0] sm:$0xff]  ;;  %v111_v21 = vld [vmem:[%s1347_s1 + $0x2b0] sm:$0xff]  ;;  %v114_v22 = vld [vmem:[%s1347_s1 + $0x2c8] sm:$0xff]  ;;  %v745_v23 = vpack.c.bf16 %v328_v15, %v326_v14  ;;  %v747_v25 = vpack.c.bf16 %v333_v17, %v331_v16  ;;  %v503_v15 = vand.u32 127, %v123_v54  ;;  %v498_v16 = vstv %s1350_s4 }
  0x4a   :  { %672 = vmatprep.subr.bf16.mxu0 %v671_v48  ;;  %v116_v24 = vld [vmem:[%s1347_s1 + $0x2d8] sm:$0xff]  ;;  %v330_v26 = vld [vmem:[%s1349_s3 + $0x1a0] sm:$0xff]  ;;  %v332_v27 = vld [vmem:[%s1349_s3 + $0x1b0] sm:$0xff]  ;;  %v685_v30 = vpack.c.bf16 %v111_v21, %v109_v20 }
  0x4b   :  { %v335_v28 = vld [vmem:[%s1349_s3 + $0x1c8] sm:$0xff]  ;;  %v337_v29 = vld [vmem:[%s1349_s3 + $0x1d8] sm:$0xff]  ;;  %v687_v31 = vpack.c.bf16 %v116_v24, %v114_v22  ;;  %v113_v32 = vld [vmem:[%s1347_s1 + $0x2c0] sm:$0xff]  ;;  %v749_v35 = vpack.c.bf16 %v332_v27, %v330_v26  ;;  %vm504_vm3 = vcmp.eq.s32.totalorder %v124_v55, %v503_v15 }
  0x4c   :  { %738 = vmatpush1.bf16.msra.mxu1 %v737_v63  ;;  %v115_v33 = vld [vmem:[%s1347_s1 + $0x2d0] sm:$0xff]  ;;  %v118_v34 = vld [vmem:[%s1347_s1 + $0x2e8] sm:$0xff]  ;;  %v120_v36 = vld [vmem:[%s1347_s1 + $0x2f8] sm:$0xff]  ;;  %v751_v37 = vpack.c.bf16 %v337_v29, %v335_v28 }
  0x4d   :  { %674 = vmatpush1.bf16.msra.mxu0 %v673_v58  ;;  %740 = vmatprep.subr.bf16.mxu1 %v739_v1  ;;  %v334_v38 = vld [vmem:[%s1349_s3 + $0x1c0] sm:$0xff]  ;;  %v336_v39 = vld [vmem:[%s1349_s3 + $0x1d0] sm:$0xff]  ;;  %v689_v40 = vpack.c.bf16 %v115_v33, %v113_v32  ;;  %v691_v42 = vpack.c.bf16 %v120_v36, %v118_v34  ;;  %v24_v48 = vld [vmem:[%s1346_s0 + $0x8] sm:$0xf]  ;;  %v125_v58 = vsub.s32 0, %v124_v55 }
  0x4e   :  { %676 = vmatprep.subr.bf16.mxu0 %v675_v59  ;;  %v117_v43 = vld [vmem:[%s1347_s1 + $0x2e0] sm:$0xff]  ;;  %v119_v44 = vld [vmem:[%s1347_s1 + $0x2f0] sm:$0xff]  ;;  %v753_v45 = vpack.c.bf16 %v336_v39, %v334_v38  ;;  %v339_v49 = vld [vmem:[%s1349_s3 + $0x1e8] sm:$0xff] }
  0x4f   :  { %v693_v46 = vpack.c.bf16 %v119_v44, %v117_v43  ;;  %v341_v41 = vld [vmem:[%s1349_s3 + $0x1f8] sm:$0xff]  ;;  %v338_v51 = vld [vmem:[%s1349_s3 + $0x1e0] sm:$0xff]  ;;  %v340_v52 = vld [vmem:[%s1349_s3 + $0x1f0] sm:$0xff] }
  0x50   :  { %742 = vmatpush1.bf16.msra.mxu1 %v741_v11  ;;  %v755_v50 = vpack.c.bf16 %v341_v41, %v339_v49  ;;  %v757_v53 = vpack.c.bf16 %v340_v52, %v338_v51  ;;  %v121_v57 = vld [vmem:[%s1348_s2] sm:$0x3] }
  0x51   :  { %678 = vmatpush1.bf16.msra.mxu0 %v677_v6  ;;  %744 = vmatprep.subr.bf16.mxu1 %v743_v13  ;;  %v130_v59 = vrot.slane %v121_v57, %v129_v56  ;;  %v126_v60 = vrot.slane %v121_v57, %v125_v58 }
  0x52   :  { %680 = vmatprep.subr.bf16.mxu0 %v679_v7 }
  0x54   :  { %746 = vmatpush1.bf16.msra.mxu1 %v745_v23 }
  0x55   :  { %682 = vmatpush1.bf16.msra.mxu0 %v681_v18  ;;  %748 = vmatprep.subr.bf16.mxu1 %v747_v25 }
  0x56   :  { %684 = vmatprep.subr.bf16.mxu0 %v683_v19 }
  0x58   :  { %750 = vmatpush1.bf16.msra.mxu1 %v749_v35 }
  0x59   :  { %686 = vmatpush1.bf16.msra.mxu0 %v685_v30  ;;  %752 = vmatprep.subr.bf16.mxu1 %v751_v37 }
  0x5a   :  { %688 = vmatprep.subr.bf16.mxu0 %v687_v31 }
  0x5c   :  { %754 = vmatpush1.bf16.msra.mxu1 %v753_v45 }
  0x5d   :  { %690 = vmatpush1.bf16.msra.mxu0 %v689_v40  ;;  %756 = vmatprep.subr.bf16.mxu1 %v755_v50 }
  0x5e   :  { %692 = vmatprep.subr.bf16.mxu0 %v691_v42 }
  0x60   :  { %758 = vmatpush1.bf16.msra.mxu1 %v757_v53 }
  0x61   :  { %694 = vmatpush1.bf16.msra.mxu0 %v693_v46  ;;  %594 = vmatprep.subr.mxu1 %v797_v47 }
  0x64   :  { %272 = vmatmul.mubr.f32.vlgmr.msra.gmra.mrb[0].mxu0 %v24_v48 }
 0x137   :  { %v273_v61 = vpop.f32.mrb[0].mxu0 }
 0x138   :  { %v275_v62 = vpop.f32.mrb[1].mxu0  ;;  %v759_v0 = vadd.f32 %v273_v61, %v126_v60 }
 0x139   :  { %v760_v63 = vadd.f32 %v275_v62, %v130_v59 }
 0x13b   :  { %406 = vmatprep.mubr.f32.mxu1 %v760_v63 }
 0x13c   :  { %407 = vmatmul.mubr.f32.vlgmr.msra.gmra.mrb[0].mxu1 %v759_v0 }
 0x13d   :  { %596 = vmatprep.mubr.msk.f32.mxu1 %vm798_vm1, %v797_v47 }
 0x20f   :  { %v408_v1 = vpop.f32.mrb[0].mxu1 }
 0x210   :  { %v410_v2 = vpop.f32.mrb[1].mxu1  ;;  %v413_v4 = vmul.f32 %v408_v1, %v408_v1 }
 0x211   :  { %v421_v3 = vmul.f32 %v410_v2, %v410_v2 }
 0x212   :  { %v415_v6 = vsel %vm414_vm0, %v413_v4, 0.0 }
 0x213   :  { %v422_v5 = vsel %vm414_vm0, %v421_v3, 0.0 }
 0x214   :  { %423 = vadd.xlane.f32.xlu0 %v422_v5 }
 0x218   :  { %416 = vadd.xlane.f32.xlu0 %v415_v6 }
 0x2a1   :  { %v424_v7 = vpop.xlane.xlu0 %423 }
 0x2a2   :  { %v425_v8 = vmax.f32 %v424_v7, 1e-24 }
 0x2a4   :  { %773 = vrsqrt.f32 %v425_v8 }
 0x2a5   :  { %v417_v9 = vpop.xlane.xlu0 %416 }
 0x2a6   :  { %v418_v10 = vmax.f32 %v417_v9, 1e-24 }
 0x2a8   :  { %775 = vrsqrt.f32 %v418_v10 }
 0x2ae   :  { %v774_v11 = vpop.eup %773 }
 0x2af   :  { %v427_v12 = vmul.f32 %v774_v11, %v410_v2 }
 0x2b1   :  { %595 = vmatpush3.xpose.msra.mxu1 %v427_v12 }
 0x2b2   :  { %v776_v13 = vpop.eup %775 }
 0x2b3   :  { %v420_v14 = vmul.f32 %v776_v13, %v408_v1 }
 0x2b5   :  { %597 = vmatmul.mubr.f32.vlgmr.msra.gmra.mrb[2].mxu1 %v420_v14 }
 0x388   :  { %v494_v17 = vpop.f32.mrb[2].mxu1 }
 0x389   :  { %v499_v47 = vmul.f32 %v498_v16, %v494_v17  ;;  %v598_v18 = vpop.f32.mrb[3].mxu1 }
 0x38b   :  { %v517_v19 = vsel %vm506_vm2, %v499_v47, -inf  ;;  %v505_v20 = vsel %vm504_vm3, %v499_v47, 0.0 }
 0x38c   :  { %518 = vmax.xlane.f32.xlu1 %v517_v19  ;;  %v529_v21 = vrot.slane %v517_v19, 4  ;;  %v507_v22 = vsel %vm506_vm2, %v505_v20, 0.0 }
 0x38d   :  { %508 = vadd.xlane.f32.xlu0 %v507_v22 }
 0x38e   :  { %v530_v23 = vmax.f32 %v517_v19, %v529_v21 }
 0x390   :  { %v531_v24 = vrot.slane %v530_v23, 2 }
 0x392   :  { %v532_v25 = vmax.f32 %v530_v23, %v531_v24 }
 0x394   :  { %v533_v26 = vrot.slane %v532_v25, 1 }
 0x396   :  { %v534_v27 = vmax.f32 %v532_v25, %v533_v26 }
 0x398   :  { %v535_v28 = vsub.f32 %v499_v47, %v534_v27 }
 0x39a   :  { %v536_v29 = vmul.f32 1.442695, %v535_v28 }
 0x39c   :  { %777 = vpow2.f32 %v536_v29 }
 0x3a6   :  { %v778_v30 = vpop.eup %777 }
 0x3a7   :  { %v538_v31 = vsel %vm506_vm2, %v778_v30, 0.0 }
 0x3a8   :  { %v539_v32 = vrot.slane %v538_v31, 4 }
 0x3aa   :  { %v540_v33 = vadd.f32 %v539_v32, %v538_v31 }
 0x3ac   :  { %v541_v34 = vrot.slane %v540_v33, 2 }
 0x3ae   :  { %v542_v35 = vadd.f32 %v541_v34, %v540_v33 }
 0x3b0   :  { %v543_v36 = vrot.slane %v542_v35, 1 }
 0x3b2   :  { %v544_v37 = vadd.f32 %v543_v36, %v542_v35 }
 0x3b4   :  { %779 = vlog2.f32 %v544_v37 }
 0x3be   :  { %v780_v38 = vpop.eup %779 }
 0x3bf   :  { %v546_v39 = vmul.f32 0.6931472, %v780_v38 }
 0x3c1   :  { %v547_v40 = vadd.f32 %v546_v39, %v534_v27 }
 0x3c3   :  { %v560_v42 = vsel %vm559_vm4, %v547_v40, 0.0 }
 0x3c4   :  { %561 = vadd.xlane.f32.xlu0 %v560_v42 }
 0x419   :  { %v519_v43 = vpop.xlane.xlu1 %518 }
 0x41a   :  { %v520_v44 = vsub.f32 %v499_v47, %v519_v43  ;;  %v509_v45 = vpop.xlane.xlu0 %508 }
 0x41b   :  { %v510_v46 = vrot.slane %v509_v45, 4 }
 0x41c   :  { %v521_v48 = vmul.f32 1.442695, %v520_v44 }
 0x41d   :  { %v511_v49 = vadd.f32 %v510_v46, %v509_v45 }
 0x41e   :  { %781 = vpow2.f32 %v521_v48 }
 0x41f   :  { %v512_v41 = vrot.slane %v511_v49, 2 }
 0x421   :  { %v513_v50 = vadd.f32 %v512_v41, %v511_v49 }
 0x423   :  { %v514_v51 = vrot.slane %v513_v50, 1 }
 0x425   :  { %v515_v52 = vadd.f32 %v514_v51, %v513_v50 }
 0x427   :  { %763 = vpush %v515_v52 }
 0x428   :  { %v782_v53 = vpop.eup %781 }
 0x429   :  { %v523_v54 = vsel %vm506_vm2, %v782_v53, 0.0 }
 0x42a   :  { %524 = vadd.xlane.f32.xlu1 %v523_v54 }
 0x451   :  { %v562_v60 = vpop.xlane.xlu0 %561 }
 0x452   :  { %v563_v61 = vrot.slane %v562_v60, 4 }
 0x454   :  { %v564_v62 = vadd.f32 %v563_v61, %v562_v60 }
 0x456   :  { %v565_v63 = vrot.slane %v564_v62, 2 }
 0x458   :  { %v566_v3 = vadd.f32 %v565_v63, %v564_v62  ;;  %s764_s4 = spop %763 }
 0x459   :  { %s571_s19 = smul.f32 2.0, %s764_s4 }
 0x45a   :  { %v567_v6 = vrot.slane %v566_v3, 1 }
 0x45c   :  { %v568_v9 = vadd.f32 %v567_v6, %v566_v3 }
 0x4b7   :  { %v525_v55 = vpop.xlane.xlu1 %524 }
 0x4b8   :  { %783 = vlog2.f32 %v525_v55 }
 0x4c2   :  { %v784_v56 = vpop.eup %783 }
 0x4c3   :  { %v527_v57 = vmul.f32 0.6931472, %v784_v56 }
 0x4c5   :  { %v528_v58 = vadd.f32 %v527_v57, %v519_v43 }
 0x4c7   :  { %v549_v59 = vsel %vm548_vm5, %v528_v58, 0.0 }
 0x4c8   :  { %550 = vadd.xlane.f32.xlu1 %v549_v59 }
 0x555   :  { %v551_v0 = vpop.xlane.xlu1 %550 }
 0x556   :  { %v552_v1 = vrot.slane %v551_v0, 4 }
 0x558   :  { %v553_v2 = vadd.f32 %v552_v1, %v551_v0 }
 0x55a   :  { %v554_v4 = vrot.slane %v553_v2, 2 }
 0x55c   :  { %v555_v5 = vadd.f32 %v554_v4, %v553_v2 }
 0x55e   :  { %v556_v7 = vrot.slane %v555_v5, 1 }
 0x560   :  { %v557_v8 = vadd.f32 %v556_v7, %v555_v5 }
 0x562   :  { %765 = vpush %v557_v8 }
 0x563   :  { %767 = vpush %v568_v9 }
 0x593   :  { %s766_s17 = spop %765 }
 0x594   :  { %s768_s18 = spop %767 }
 0x595   :  { %s570_s20 = sadd.f32 %s768_s18, %s766_s17 }
 0x597   :  { %s572_s21 = ssub.f32 %s570_s20, %s571_s19 }
 0x599   :  { %s573_s22 = smul.f32 0.5, %s572_s21 }
 0x59b   :  { %s576_s23 = smul.f32 0.25, %s573_s22 }
 0x59d   :  { %578 = sst [smem:[#allocation3]] %s576_s23 }
 0x59e   :  { %794 = shalt.err (!%p791_p2)
}
 0x59f   :  { %s799_s6 = smov [#allocation3]  }
 0x5a0   :  { %586 = dma.smem_to_hbm %s799_s6, 16, %s1351_s5, [#allocation4]  }
 0x5a1   :  { %795 = dma.done.wait [#allocation4], 16  }
 0x5a2   :  { %796 = vsyncadd [#allocation4], 4294967280 }
 0x5a3   :  { %590 = sfence }
 0x5a4   :  { %591 = vsyncpa [#allocation4], 1 }

</bundles_post_ra>
